<compile_context>
chip_gen: v7x
topology: tpu7x:2x2x1
jax: 0.10.0
libtpu: 0.0.40
codegen_flags: <defaults>
</compile_context>

<pallas_src>
import functools

import jax
import jax.numpy as jnp
from jax import lax
from jax.experimental import pallas as pl
from jax.experimental.pallas import tpu as pltpu


def rnn_lm_kernel(ids_ref, ftab_ref, bias_ref, whh_ref, wlin_ref,
                  scale_ref, shift_ref, out_ref, *, T, B):
    TB, _ = ids_ref.shape
    V, H = ftab_ref.shape

    # --- Embedding lookup + RNN input projection fused into one matmul ---
    #   onehot(T*B, V) @ (emb @ W_ih^T) + (b_ih + b_hh)
    ids = ids_ref[...]                                            # (TB, 1) i32, time-major flat
    iota_v = lax.broadcasted_iota(jnp.int32, (TB, V), 1)
    onehot = (ids == iota_v).astype(jnp.float32)                  # (TB, V)
    x_proj = jnp.dot(onehot, ftab_ref[...],
                     preferred_element_type=jnp.float32) + bias_ref[...]   # (TB, H)
    # TODO(synk): nn.Dropout(p=0.3) after the embedding is identity in eval mode.

    # --- Single-layer unidirectional tanh RNN, statically unrolled over T ---
    # Only the unavoidable (B,H)x(H,H) dot + tanh stays on the serial chain.
    whh = whh_ref[...]
    h = jnp.zeros((B, H), jnp.float32)
    hs = []
    for t in range(T):
        h = jnp.tanh(x_proj[t * B:(t + 1) * B, :]
                     + jnp.dot(h, whh, preferred_element_type=jnp.float32))
        hs.append(h)
    seq = jnp.concatenate(hs, axis=0)                             # (TB, H) time-major

    # --- Linear + folded eval-mode BatchNorm as one matmul + per-row FMA ---
    logits = jnp.dot(seq, wlin_ref[...],
                     preferred_element_type=jnp.float32)          # (TB, V)
    out_ref[...] = scale_ref[...] * logits + shift_ref[...]


def rnn_model_forward(ids, params):
    B, T = ids.shape
    V, E = params['emb'].shape
    H = params['whh_t'].shape[0]
    TB = T * B

    # ---- wrapper-side folds (tiny glue compute, outside the kernel) ----
    # Embedding table folded into the RNN input projection.
    fused_table = (params['emb'] @ params['wih_t']).astype(jnp.float32)        # (V, H)
    bias = (params['bih'] + params['bhh']).reshape(1, H).astype(jnp.float32)   # (1, H)

    # Eval-mode BatchNorm1d(T) folded THROUGH the final Linear:
    #   y = scale_t * seq + shift_t ;  y @ W + b
    #     = scale_t * (seq @ W) + (shift_t * colsum(W) + b)
    eps = 1e-5
    inv = params['bn_gamma'] / jnp.sqrt(params['bn_var'] + eps)                # (T,)
    bn_shift = params['bn_beta'] - params['bn_mean'] * inv                     # (T,)
    colsum_wlin = jnp.sum(params['wlin_t'], axis=0)                            # (V,)
    shift_tv = bn_shift[:, None] * colsum_wlin[None, :] + params['blin'][None, :]  # (T, V)

    # Expand per-timestep scale/shift to the time-major flat (T*B, ·) row layout.
    scale_flat = jnp.repeat(inv.reshape(T, 1), B, axis=0).astype(jnp.float32)  # (TB, 1)
    shift_flat = jnp.repeat(shift_tv, B, axis=0).astype(jnp.float32)           # (TB, V)

    # Time-major flat ids: row t*B + b == ids[b, t].
    ids_flat = jnp.transpose(ids, (1, 0)).reshape(TB, 1).astype(jnp.int32)

    vmem = pl.BlockSpec(memory_space=pltpu.MemorySpace.VMEM)
    kernel = functools.partial(rnn_lm_kernel, T=T, B=B)
    args = (ids_flat, fused_table, bias,
            params['whh_t'].astype(jnp.float32),
            params['wlin_t'].astype(jnp.float32),
            scale_flat, shift_flat)

    out_flat = pl.pallas_call(
        kernel,
        out_shape=jax.ShapeDtypeStruct((TB, V), jnp.float32),
        in_specs=[vmem] * len(args),
        out_specs=vmem,
        compiler_params=pltpu.CompilerParams(vmem_limit_bytes=32 * 1024 * 1024),
    )(*args)

    # Time-major (T*B, V) -> (B, T, V), matching PyTorch batch_first=True.
    return jnp.transpose(out_flat.reshape(T, B, V), (1, 0, 2))


def reference_forward(ids, params):
    """Pure-JAX reference mirroring the PyTorch forward (eval mode)."""
    emb = params['emb'][ids]                                        # (B, T, E)
    B, T, _ = emb.shape
    H = params['whh_t'].shape[0]

    def step(h, x_t):
        h_new = jnp.tanh(x_t @ params['wih_t'] + params['bih']
                         + h @ params['whh_t'] + params['bhh'])
        return h_new, h_new

    _, seq = lax.scan(step, jnp.zeros((B, H), jnp.float32),
                      jnp.transpose(emb, (1, 0, 2)))                # (T, B, H)
    x = jnp.transpose(seq, (1, 0, 2))                               # (B, T, H)
    eps = 1e-5
    inv = params['bn_gamma'] / jnp.sqrt(params['bn_var'] + eps)
    x = (x - params['bn_mean'][None, :, None]) * inv[None, :, None] \
        + params['bn_beta'][None, :, None]
    return x @ params['wlin_t'] + params['blin']


def init_params(key, V, E, H, T):
    ks = jax.random.split(key, 9)
    s = 1.0 / jnp.sqrt(jnp.float32(H))
    return {
        # nn.Embedding(V, E)
        'emb': 0.1 * jax.random.normal(ks[0], (V, E), jnp.float32),
        # nn.RNN weights pre-transposed: x @ W_ih^T -> (E, H), h @ W_hh^T -> (H, H)
        'wih_t': jax.random.uniform(ks[1], (E, H), jnp.float32, -s, s),
        'whh_t': jax.random.uniform(ks[2], (H, H), jnp.float32, -s, s),
        'bih': jax.random.uniform(ks[3], (H,), jnp.float32, -s, s),
        'bhh': jax.random.uniform(ks[4], (H,), jnp.float32, -s, s),
        # nn.BatchNorm1d(max_label_length=T), eval mode running stats + affine
        'bn_gamma': 1.0 + 0.1 * jax.random.normal(ks[5], (T,), jnp.float32),
        'bn_beta': 0.05 * jax.random.normal(ks[6], (T,), jnp.float32),
        'bn_mean': jnp.zeros((T,), jnp.float32),
        'bn_var': jnp.ones((T,), jnp.float32),
        # nn.Linear(H, V) pre-transposed (H, V)
        'wlin_t': jax.random.uniform(ks[7], (H, V), jnp.float32, -s, s),
        'blin': jax.random.uniform(ks[8], (V,), jnp.float32, -s, s),
    }


if __name__ == "__main__":
    B, T, V, E, H = 2, 8, 32, 32, 32
    key = jax.random.PRNGKey(0)
    k_ids, k_par = jax.random.split(key)

    ids = jax.random.randint(k_ids, (B, T), 0, V, dtype=jnp.int32)
    params = init_params(k_par, V, E, H, T)

    out = rnn_model_forward(ids, params)
    out = jax.block_until_ready(out)

    ref = jax.block_until_ready(reference_forward(ids, params))
    assert out.shape == (B, T, V), out.shape
    assert jnp.allclose(out, ref, atol=2e-3, rtol=2e-3), \
        float(jnp.max(jnp.abs(out - ref)))

    print("KERNEL_OK")
</pallas_src>

<mosaic_0001>
module attributes {stable_mosaic.version = 11 : i64} {
  func.func @rnn_lm_kernel(%arg0: memref<16x1xi32, #tpu.memory_space<vmem>>, %arg1: memref<32x32xf32, #tpu.memory_space<vmem>>, %arg2: memref<1x32xf32, #tpu.memory_space<vmem>>, %arg3: memref<32x32xf32, #tpu.memory_space<vmem>>, %arg4: memref<32x32xf32, #tpu.memory_space<vmem>>, %arg5: memref<16x1xf32, #tpu.memory_space<vmem>>, %arg6: memref<16x32xf32, #tpu.memory_space<vmem>>, %arg7: memref<16x32xf32, #tpu.memory_space<vmem>>) attributes {dimension_semantics = [], scalar_prefetch = 0 : i64, scratch_operands = 0 : i64, tpu.core_type = #tpu.core_type<tc>} {
    %c0 = arith.constant 0 : index
    %c0_0 = arith.constant 0 : index
    %0 = vector.load %arg0[%c0, %c0_0] : memref<16x1xi32, #tpu.memory_space<vmem>>, vector<16x1xi32>
    %1 = tpu.iota {dimensions = array<i32: 1>} : vector<16x32xi32>
    %2 = vector.broadcast %0 : vector<16x1xi32> to vector<16x32xi32>
    %3 = arith.cmpi eq, %2, %1 : vector<16x32xi32>
    %4 = arith.extui %3 : vector<16x32xi1> to vector<16x32xi32>
    %5 = arith.sitofp %4 : vector<16x32xi32> to vector<16x32xf32>
    %c0_1 = arith.constant 0 : index
    %c0_2 = arith.constant 0 : index
    %6 = vector.load %arg1[%c0_1, %c0_2] : memref<32x32xf32, #tpu.memory_space<vmem>>, vector<32x32xf32>
    %cst = arith.constant dense<0.000000e+00> : vector<16x32xf32>
    %7 = tpu.matmul %5, %6, %cst {dimension_numbers = #tpu.dot_dimension_numbers<[1], [0], [0], [1], [0, 0, 1, 1], [], []>} : vector<16x32xf32>, vector<32x32xf32>, vector<16x32xf32> -> vector<16x32xf32>
    %c0_3 = arith.constant 0 : index
    %c0_4 = arith.constant 0 : index
    %8 = vector.load %arg2[%c0_3, %c0_4] : memref<1x32xf32, #tpu.memory_space<vmem>>, vector<1x32xf32>
    %9 = vector.broadcast %8 : vector<1x32xf32> to vector<16x32xf32>
    %10 = arith.addf %7, %9 : vector<16x32xf32>
    %c0_5 = arith.constant 0 : index
    %c0_6 = arith.constant 0 : index
    %11 = vector.load %arg3[%c0_5, %c0_6] : memref<32x32xf32, #tpu.memory_space<vmem>>, vector<32x32xf32>
    %cst_7 = arith.constant 0.000000e+00 : f32
    %12 = vector.broadcast %cst_7 : f32 to vector<2x32xf32>
    %13 = vector.extract_strided_slice %10 {offsets = [0, 0], sizes = [2, 32], strides = [1, 1]} : vector<16x32xf32> to vector<2x32xf32>
    %cst_8 = arith.constant dense<0.000000e+00> : vector<2x32xf32>
    %14 = tpu.matmul %12, %11, %cst_8 {dimension_numbers = #tpu.dot_dimension_numbers<[1], [0], [0], [1], [0, 0, 1, 1], [], []>} : vector<2x32xf32>, vector<32x32xf32>, vector<2x32xf32> -> vector<2x32xf32>
    %15 = arith.addf %13, %14 : vector<2x32xf32>
    %16 = math.tanh %15 : vector<2x32xf32>
    %17 = vector.extract_strided_slice %10 {offsets = [2, 0], sizes = [2, 32], strides = [1, 1]} : vector<16x32xf32> to vector<2x32xf32>
    %cst_9 = arith.constant dense<0.000000e+00> : vector<2x32xf32>
    %18 = tpu.matmul %16, %11, %cst_9 {dimension_numbers = #tpu.dot_dimension_numbers<[1], [0], [0], [1], [0, 0, 1, 1], [], []>} : vector<2x32xf32>, vector<32x32xf32>, vector<2x32xf32> -> vector<2x32xf32>
    %19 = arith.addf %17, %18 : vector<2x32xf32>
    %20 = math.tanh %19 : vector<2x32xf32>
    %21 = vector.extract_strided_slice %10 {offsets = [4, 0], sizes = [2, 32], strides = [1, 1]} : vector<16x32xf32> to vector<2x32xf32>
    %cst_10 = arith.constant dense<0.000000e+00> : vector<2x32xf32>
    %22 = tpu.matmul %20, %11, %cst_10 {dimension_numbers = #tpu.dot_dimension_numbers<[1], [0], [0], [1], [0, 0, 1, 1], [], []>} : vector<2x32xf32>, vector<32x32xf32>, vector<2x32xf32> -> vector<2x32xf32>
    %23 = arith.addf %21, %22 : vector<2x32xf32>
    %24 = math.tanh %23 : vector<2x32xf32>
    %25 = vector.extract_strided_slice %10 {offsets = [6, 0], sizes = [2, 32], strides = [1, 1]} : vector<16x32xf32> to vector<2x32xf32>
    %cst_11 = arith.constant dense<0.000000e+00> : vector<2x32xf32>
    %26 = tpu.matmul %24, %11, %cst_11 {dimension_numbers = #tpu.dot_dimension_numbers<[1], [0], [0], [1], [0, 0, 1, 1], [], []>} : vector<2x32xf32>, vector<32x32xf32>, vector<2x32xf32> -> vector<2x32xf32>
    %27 = arith.addf %25, %26 : vector<2x32xf32>
    %28 = math.tanh %27 : vector<2x32xf32>
    %29 = vector.extract_strided_slice %10 {offsets = [8, 0], sizes = [2, 32], strides = [1, 1]} : vector<16x32xf32> to vector<2x32xf32>
    %cst_12 = arith.constant dense<0.000000e+00> : vector<2x32xf32>
    %30 = tpu.matmul %28, %11, %cst_12 {dimension_numbers = #tpu.dot_dimension_numbers<[1], [0], [0], [1], [0, 0, 1, 1], [], []>} : vector<2x32xf32>, vector<32x32xf32>, vector<2x32xf32> -> vector<2x32xf32>
    %31 = arith.addf %29, %30 : vector<2x32xf32>
    %32 = math.tanh %31 : vector<2x32xf32>
    %33 = vector.extract_strided_slice %10 {offsets = [10, 0], sizes = [2, 32], strides = [1, 1]} : vector<16x32xf32> to vector<2x32xf32>
    %cst_13 = arith.constant dense<0.000000e+00> : vector<2x32xf32>
    %34 = tpu.matmul %32, %11, %cst_13 {dimension_numbers = #tpu.dot_dimension_numbers<[1], [0], [0], [1], [0, 0, 1, 1], [], []>} : vector<2x32xf32>, vector<32x32xf32>, vector<2x32xf32> -> vector<2x32xf32>
    %35 = arith.addf %33, %34 : vector<2x32xf32>
    %36 = math.tanh %35 : vector<2x32xf32>
    %37 = vector.extract_strided_slice %10 {offsets = [12, 0], sizes = [2, 32], strides = [1, 1]} : vector<16x32xf32> to vector<2x32xf32>
    %cst_14 = arith.constant dense<0.000000e+00> : vector<2x32xf32>
    %38 = tpu.matmul %36, %11, %cst_14 {dimension_numbers = #tpu.dot_dimension_numbers<[1], [0], [0], [1], [0, 0, 1, 1], [], []>} : vector<2x32xf32>, vector<32x32xf32>, vector<2x32xf32> -> vector<2x32xf32>
    %39 = arith.addf %37, %38 : vector<2x32xf32>
    %40 = math.tanh %39 : vector<2x32xf32>
    %41 = vector.extract_strided_slice %10 {offsets = [14, 0], sizes = [2, 32], strides = [1, 1]} : vector<16x32xf32> to vector<2x32xf32>
    %cst_15 = arith.constant dense<0.000000e+00> : vector<2x32xf32>
    %42 = tpu.matmul %40, %11, %cst_15 {dimension_numbers = #tpu.dot_dimension_numbers<[1], [0], [0], [1], [0, 0, 1, 1], [], []>} : vector<2x32xf32>, vector<32x32xf32>, vector<2x32xf32> -> vector<2x32xf32>
    %43 = arith.addf %41, %42 : vector<2x32xf32>
    %44 = math.tanh %43 : vector<2x32xf32>
    %45 = tpu.concatenate %16, %20, %24, %28, %32, %36, %40, %44 in 0 : vector<2x32xf32>, vector<2x32xf32>, vector<2x32xf32>, vector<2x32xf32>, vector<2x32xf32>, vector<2x32xf32>, vector<2x32xf32>, vector<2x32xf32> -> vector<16x32xf32>
    %c0_16 = arith.constant 0 : index
    %c0_17 = arith.constant 0 : index
    %46 = vector.load %arg4[%c0_16, %c0_17] : memref<32x32xf32, #tpu.memory_space<vmem>>, vector<32x32xf32>
    %cst_18 = arith.constant dense<0.000000e+00> : vector<16x32xf32>
    %47 = tpu.matmul %45, %46, %cst_18 {dimension_numbers = #tpu.dot_dimension_numbers<[1], [0], [0], [1], [0, 0, 1, 1], [], []>} : vector<16x32xf32>, vector<32x32xf32>, vector<16x32xf32> -> vector<16x32xf32>
    %c0_19 = arith.constant 0 : index
    %c0_20 = arith.constant 0 : index
    %48 = vector.load %arg5[%c0_19, %c0_20] : memref<16x1xf32, #tpu.memory_space<vmem>>, vector<16x1xf32>
    %49 = vector.broadcast %48 : vector<16x1xf32> to vector<16x32xf32>
    %50 = arith.mulf %49, %47 : vector<16x32xf32>
    %c0_21 = arith.constant 0 : index
    %c0_22 = arith.constant 0 : index
    %51 = vector.load %arg6[%c0_21, %c0_22] : memref<16x32xf32, #tpu.memory_space<vmem>>, vector<16x32xf32>
    %52 = arith.addf %50, %51 : vector<16x32xf32>
    %c0_23 = arith.constant 0 : index
    %c0_24 = arith.constant 0 : index
    %53 = vector.load %arg7[%c0_23, %c0_24] : memref<16x32xf32, #tpu.memory_space<vmem>>, vector<16x32xf32>
    tpu.vector_store %arg7[%c0_23, %c0_24], %52 {strides = array<i32>} : memref<16x32xf32, #tpu.memory_space<vmem>>, vector<16x32xf32>,
    return
  }
}

</mosaic_0001>

<bundles_post_ra>
// kernel: tpu_custom_call.1
= control target key start
LH: loop header
LB: loop body
LE: loop exit
PB: predicated region body
PF: predicated region fallthrough
CT: control target
= control target key end

     0   :  { %12 = vsyncpa [#allocation3], 0  ;;  %s1469_s0 = inlined_call_operand.vmem [shape: s32[16,1], index: 0, kind: input, shape index: {}]   ;;  %s1470_s1 = inlined_call_operand.vmem [shape: f32[32,32], index: 1, kind: input, shape index: {}]   ;;  %s1471_s2 = inlined_call_operand.vmem [shape: f32[1,32], index: 2, kind: input, shape index: {}]   ;;  %s1472_s3 = inlined_call_operand.hbm [shape: f32[32,32], index: 3, kind: input, shape index: {}]   ;;  %s1473_s4 = inlined_call_operand.hbm [shape: f32[32,32], index: 4, kind: input, shape index: {}]   ;;  %s1474_s5 = inlined_call_operand.vmem [shape: f32[16,1], index: 5, kind: input, shape index: {}]   ;;  %s1475_s6 = inlined_call_operand.vmem [shape: f32[16,32], index: 6, kind: input, shape index: {}]   ;;  %s1476_s7 = inlined_call_operand.hbm [shape: f32[16,32], index: 7, kind: output, shape index: {}]  }
   0x1   :  { %13 = vsyncpa [#allocation6], 0 }
   0x2   :  { %14 = vsyncpa [#allocation4], 0  ;;  %s1262_s24 = smov [#allocation2]   ;;  %s1190_s28 = scalar_lea.hbm %s1472_s3, 512 }
   0x3   :  { %s26_s25 = sshll.u32 %s1262_s24, 4  ;;  %p1191_p0 = scmp.ne.s32.totalorder %s1472_s3, %s1190_s28  ;;  %s27_s25 = int_to_ptr.vmem [resolvable:$true] %s26_s25 }
   0x4   :  { %p1194_p1 = scmp.lt.u32.totalorder %s1190_s28, %s1472_s3 }
   0x6   :  { %p1196_p2 = pnand %p1194_p1, %p1191_p0 }
   0x8   :  { %1199 = shalt.err (!%p1196_p2)
}
   0x9   :  { %s1200_s10 = scalar_lea.vmem %s27_s25, 512  ;;  %p1205_p4 = scmp.lt.s32.totalorder %s27_s25, %s27_s25 }
   0xa   :  { %p1201_p3 = scmp.ne.s32.totalorder %s27_s25, %s1200_s10  ;;  %p1206_p5 = scmp.lt.s32.totalorder %s1200_s10, %s1200_s10 }
   0xc   :  { %p1207_p6 = por %p1206_p5, %p1205_p4 }
   0xe   :  { %p1208_p7 = pnand %p1207_p6, %p1201_p3 }
  0x10   :  { %1211 = shalt.err (!%p1208_p7)
}
  0x11   :  { %s1263_s11 = smov 128   ;;  %s1264_s12 = smov 8  }
  0x12   :  { %32 = dma.hbm_to_vmem [thread:$0]  %s1472_s3, 512, %s27_s25, [#allocation3], %s1263_s11, %s1263_s11, %s1264_s12  }
  0x13   :  { %s1265_s15 = smov [#allocation5]   ;;  %s1212_s19 = scalar_lea.hbm %s1473_s4, 512 }
  0x14   :  { %s38_s16 = sshll.u32 %s1265_s15, 4  ;;  %p1213_p8 = scmp.ne.s32.totalorder %s1473_s4, %s1212_s19  ;;  %s39_s16 = int_to_ptr.vmem [resolvable:$true] %s38_s16 }
  0x15   :  { %p1216_p9 = scmp.lt.u32.totalorder %s1212_s19, %s1473_s4 }
  0x17   :  { %p1218_p10 = pnand %p1216_p9, %p1213_p8 }
  0x19   :  { %1221 = shalt.err (!%p1218_p10)
}
  0x1a   :  { %s1222_s24 = scalar_lea.vmem %s39_s16, 512  ;;  %p1227_p12 = scmp.lt.s32.totalorder %s39_s16, %s39_s16 }
  0x1b   :  { %p1223_p11 = scmp.ne.s32.totalorder %s39_s16, %s1222_s24  ;;  %p1228_p13 = scmp.lt.s32.totalorder %s1222_s24, %s1222_s24 }
  0x1d   :  { %p1229_p0 = por %p1228_p13, %p1227_p12 }
  0x1f   :  { %p1230_p1 = pnand %p1229_p0, %p1223_p11 }
  0x21   :  { %1233 = shalt.err (!%p1230_p1)
}
  0x22   :  { %44 = dma.hbm_to_vmem [thread:$0]  %s1473_s4, 512, %s39_s16, [#allocation6], %s1263_s11, %s1263_s11, %s1264_s12  }
  0x23   :  { %1256 = dma.done.wait [#allocation3], 512  }
  0x24   :  { %1257 = vsyncadd [#allocation3], 4294966784 }
  0x25   :  { %1258 = dma.done.wait [#allocation6], 512  }
  0x26   :  { %1259 = vsyncadd [#allocation6], 4294966784  ;;  %v1266_v0 = vmov 0   ;;  %v55_v1 = vld [vmem:[%s1469_s0] sm:$0xff]  ;;  %v72_v3 = vld [vmem:[%s1470_s1 + $0x8] sm:$0xff]  ;;  %v1267_v4 = vmov 0.0|0.0   ;;  %v57_v17 = vlaneseq }
  0x27   :  { %1172 = vset.pattern.permute.xlu0 %v1266_v0  ;;  %1173 = vset.pattern.permute.xlu1 %v1266_v0  ;;  %v71_v2 = vld [vmem:[%s1470_s1] sm:$0xff]  ;;  %v165_v6 = vld [vmem:[#allocation2 + $0x8] sm:$0xff]  ;;  %v73_v10 = vld [vmem:[%s1470_s1 + $0x10] sm:$0xff]  ;;  %vm1268_vm0 = vmmov 0   ;;  %v1269_v16 = vmov 0.0   ;;  %vm82_vm1 = vcmask 261120  }
  0x28   :  { %60 = vperm.xlu0 %1172, %v55_v1   ;;  %1107 = vmatprep.subr.bf16.mxu1 %v1267_v4  ;;  %v164_v5 = vld [vmem:[#allocation2] sm:$0xff]  ;;  %v56_v7 = vld [vmem:[%s1469_s0 + $0x8] sm:$0xff]  ;;  %v1099_v8 = vpack.c.bf16 %v72_v3, %v71_v2  ;;  %v74_v11 = vld [vmem:[%s1470_s1 + $0x18] sm:$0xff]  ;;  %v58_v18 = vand.u32 127, %v57_v17  ;;  %vm791_vm4 = vcmask 1041408   ;;  %vm793_vm5 = vcmask 1043456  }
  0x29   :  { %v1354_v9 = vpack.c.bf16 %v165_v6, %v164_v5  ;;  %v1103_v12 = vpack.c.bf16 %v74_v11, %v73_v10  ;;  %v166_v13 = vld [vmem:[#allocation2 + $0x10] sm:$0xff]  ;;  %v167_v14 = vld [vmem:[#allocation2 + $0x18] sm:$0xff]  ;;  %1008 = vmatprep.mubr.msk.f32.mxu1 %vm1268_vm0, %v1269_v16  ;;  %v925_v25 = vld [vmem:[%s1471_s2] ss:$0 sm:$0xff]  ;;  %vm795_vm6 = vcmask 1045504   ;;  %s1270_s22 = smov [#allocation7]  }
  0x2a   :  { %1100 = vmatprep.subr.bf16.mxu0 %v1099_v8  ;;  %v1363_v15 = vpack.c.bf16 %v167_v14, %v166_v13  ;;  %v803_v11 = vld [vmem:[#allocation5 + $0x18] sm:$0xff]  ;;  %v885_v13 = vld [vmem:[%s1474_s5] sm:$0xff]  ;;  %v886_v14 = vld [vmem:[%s1474_s5 + $0x8] sm:$0xff]  ;;  %s910_s23 = sshll.u32 %s1270_s22, 4  ;;  %s911_s23 = int_to_ptr.vmem [resolvable:$true] %s910_s23 }
  0x2b   :  { %1109 = vmatpush3.bf16.msra.mxu1 %v1354_v9  ;;  %1102 = vmatpush3.bf16.msra.mxu0 %v1099_v8  ;;  %v801_v8 = vld [vmem:[#allocation5 + $0x8] sm:$0xff]  ;;  %s1234_s24 = scalar_lea.vmem %s911_s23, 256  ;;  %p1239_p3 = scmp.lt.s32.totalorder %s911_s23, %s911_s23 }
  0x2c   :  { %63 = vperm.xlu0 %1172, %v56_v7   ;;  %1104 = vmatprep.subr.bf16.mxu0 %v1103_v12  ;;  %v800_v7 = vld [vmem:[#allocation5] sm:$0xff]  ;;  %p1235_p2 = scmp.ne.s32.totalorder %s911_s23, %s1234_s24  ;;  %p1240_p4 = scmp.lt.s32.totalorder %s1234_s24, %s1234_s24 }
  0x2d   :  { %1110 = vmatprep.subr.bf16.mxu1 %v1267_v4  ;;  %v1155_v10 = vpack.c.bf16 %v801_v8, %v800_v7  ;;  %889 = vperm.xlu1 %1173, %v885_v13  }
  0x2e   :  { %p1241_p5 = por %p1240_p4, %p1239_p3 }
  0x2f   :  { %1112 = vmatpush3.bf16.msra.mxu1 %v1363_v15  ;;  %1106 = vmatpush3.bf16.msra.mxu0 %v1103_v12 }
  0x30   :  { %1119 = vmatprep.subr.bf16.mxu1 %v1267_v4  ;;  %1113 = vmatprep.subr.bf16.mxu0 %v1267_v4  ;;  %p1242_p6 = pnand %p1241_p5, %p1235_p2 }
  0x31   :  { %894 = vperm.xlu1 %1173, %v886_v14  }
  0x32   :  { %1009 = vmatmul.mubr.f32.vlgmr.msra.gmra.mrb[0].mxu1 %v1269_v16 }
  0x33   :  { %1121 = vmatpush3.bf16.msra.mxu1 %v1354_v9  ;;  %1030 = vmatprep.mubr.msk.f32.mxu1 %vm1268_vm0, %v1269_v16 }
  0x34   :  { %1122 = vmatprep.subr.bf16.mxu1 %v1267_v4 }
  0x37   :  { %1124 = vmatpush3.bf16.msra.mxu1 %v1363_v15 }
  0x38   :  { %1131 = vmatprep.subr.bf16.mxu1 %v1267_v4 }
  0xa7   :  { %v61_v19 = vpop.permute.xlu0 %60 }
  0xa8   :  { %vm65_vm2 = vcmp.eq.s32.totalorder %v61_v19, %v58_v18 }
  0xa9   :  { %v923_v20 = vsel %vm65_vm2, 1.0, %v1269_v16 }
  0xaa   :  { %997 = vmatprep.mubr.msk.f32.mxu0 %vm82_vm1, %v923_v20 }
  0xab   :  { %v64_v21 = vpop.permute.xlu0 %63 }
  0xac   :  { %vm66_vm3 = vcmp.eq.s32.totalorder %v64_v21, %v58_v18  ;;  %v890_v21 = vpop.permute.xlu1 %889 }
  0xad   :  { %v924_v22 = vsel %vm66_vm3, 1.0, %v1269_v16 }
  0xae   :  { %998 = vmatmul.mubr.msk.f32.vlgmr.msra.gmra.mrb[0].mxu0 %vm82_vm1, %v924_v22 }
  0xaf   :  { %1115 = vmatpush3.bf16.msra.mxu0 %v1354_v9  ;;  %1019 = vmatprep.mubr.msk.f32.mxu0 %vm1268_vm0, %v1269_v16 }
  0xb0   :  { %1116 = vmatprep.subr.bf16.mxu0 %v1267_v4  ;;  %v895_v22 = vpop.permute.xlu1 %894 }
  0xb3   :  { %1118 = vmatpush3.bf16.msra.mxu0 %v1363_v15 }
  0xb4   :  { %1125 = vmatprep.subr.bf16.mxu0 %v1267_v4 }
 0x105   :  { %v237_v23 = vpop.f32.mrb[0].mxu1 }
 0x106   :  { %v1010_v24 = vpop.f32.mrb[1].mxu1 }
 0x107   :  { %v900_v24 = vld [vmem:[%s1475_s6 + $0x8] sm:$0xff] }
 0x181   :  { %v999_v26 = vpop.f32.mrb[0].mxu0 }
 0x182   :  { %v1391_v27 = vadd.f32 %v999_v26, %v925_v25  ;;  %v155_v28 = vpop.f32.mrb[1].mxu0 }
 0x183   :  { %v156_v29 = vadd.f32 %v925_v25, %v155_v28  ;;  %v899_v28 = vld [vmem:[%s1475_s6] sm:$0xff] }
 0x185   :  { %v241_v30 = vadd.f32 %v237_v23, %v156_v29 }
 0x187   :  { %1174 = vtanh.f32 %v241_v30 }
 0x191   :  { %v1175_v31 = vpop.eup %1174 }
 0x192   :  { %1020 = vmatmul.mubr.msk.f32.vlgmr.msra.gmra.mrb[2].mxu0 %vm82_vm1, %v1175_v31 }
 0x193   :  { %1127 = vmatpush3.bf16.msra.mxu0 %v1354_v9  ;;  %1041 = vmatprep.mubr.msk.f32.mxu0 %vm1268_vm0, %v1269_v16 }
 0x194   :  { %1128 = vmatprep.subr.bf16.mxu0 %v1267_v4 }
 0x197   :  { %1130 = vmatpush3.bf16.msra.mxu0 %v1363_v15 }
 0x198   :  { %1137 = vmatprep.subr.bf16.mxu0 %v1267_v4 }
 0x265   :  { %v312_v32 = vpop.f32.mrb[2].mxu0 }
 0x266   :  { %v317_v33 = vrot.slane %v312_v32, 6  ;;  %v1021_v34 = vpop.f32.mrb[3].mxu0 }
 0x268   :  { %v319_v35 = vadd.f32 %v317_v33, %v156_v29 }
 0x26a   :  { %1176 = vtanh.f32 %v319_v35 }
 0x274   :  { %v1177_v36 = vpop.eup %1176 }
 0x275   :  { %v322_v37 = vrot.slane %v1177_v36, 2  ;;  %v792_v43 = vsel %vm791_vm4, %v1175_v31, %v1177_v36 }
 0x277   :  { %1031 = vmatmul.mubr.msk.f32.vlgmr.msra.gmra.mrb[2].mxu1 %vm82_vm1, %v322_v37 }
 0x278   :  { %1133 = vmatpush3.bf16.msra.mxu1 %v1354_v9  ;;  %1052 = vmatprep.mubr.msk.f32.mxu1 %vm1268_vm0, %v1269_v16 }
 0x279   :  { %1134 = vmatprep.subr.bf16.mxu1 %v1267_v4 }
 0x27c   :  { %1136 = vmatpush3.bf16.msra.mxu1 %v1363_v15 }
 0x27d   :  { %1143 = vmatprep.subr.bf16.mxu1 %v1267_v4 }
 0x34a   :  { %v391_v38 = vpop.f32.mrb[2].mxu1 }
 0x34b   :  { %v396_v39 = vrot.slane %v391_v38, 4  ;;  %v1032_v40 = vpop.f32.mrb[3].mxu1 }
 0x34d   :  { %v398_v41 = vadd.f32 %v396_v39, %v156_v29 }
 0x34f   :  { %1178 = vtanh.f32 %v398_v41 }
 0x359   :  { %v1179_v42 = vpop.eup %1178 }
 0x35a   :  { %v401_v44 = vrot.slane %v1179_v42, 4  ;;  %v794_v45 = vsel %vm793_vm5, %v792_v43, %v1179_v42 }
 0x35c   :  { %1042 = vmatmul.mubr.msk.f32.vlgmr.msra.gmra.mrb[4].mxu0 %vm82_vm1, %v401_v44 }
 0x35d   :  { %1139 = vmatpush3.bf16.msra.mxu0 %v1354_v9  ;;  %1063 = vmatprep.mubr.msk.f32.mxu0 %vm1268_vm0, %v1269_v16 }
 0x35e   :  { %1140 = vmatprep.subr.bf16.mxu0 %v1267_v4 }
 0x361   :  { %1142 = vmatpush3.bf16.msra.mxu0 %v1363_v15 }
 0x362   :  { %1149 = vmatprep.subr.bf16.mxu0 %v1267_v4 }
 0x42f   :  { %v470_v46 = vpop.f32.mrb[4].mxu0 }
 0x430   :  { %v475_v47 = vrot.slane %v470_v46, 2  ;;  %v1043_v48 = vpop.f32.mrb[5].mxu0 }
 0x432   :  { %v477_v49 = vadd.f32 %v475_v47, %v156_v29 }
 0x434   :  { %1180 = vtanh.f32 %v477_v49 }
 0x43e   :  { %v1181_v50 = vpop.eup %1180 }
 0x43f   :  { %v480_v51 = vrot.slane %v1181_v50, 6  ;;  %v796_v52 = vsel %vm795_vm6, %v794_v45, %v1181_v50 }
 0x441   :  { %1053 = vmatmul.mubr.msk.f32.vlgmr.msra.gmra.mrb[4].mxu1 %vm82_vm1, %v480_v51 }
 0x442   :  { %1145 = vmatpush3.bf16.msra.mxu1 %v1354_v9  ;;  %1074 = vmatprep.mubr.msk.f32.mxu1 %vm1268_vm0, %v1269_v16 }
 0x443   :  { %1146 = vmatprep.subr.bf16.mxu1 %v1267_v4 }
 0x446   :  { %1148 = vmatpush3.bf16.msra.mxu1 %v1363_v15 }
 0x447   :  { %1156 = vmatprep.subr.bf16.mxu1 %v1155_v10 }
 0x514   :  { %v549_v53 = vpop.f32.mrb[4].mxu1 }
 0x515   :  { %v553_v54 = vadd.f32 %v549_v53, %v1391_v27  ;;  %v1054_v55 = vpop.f32.mrb[5].mxu1 }
 0x517   :  { %1182 = vtanh.f32 %v553_v54 }
 0x521   :  { %v1183_v56 = vpop.eup %1182 }
 0x522   :  { %1064 = vmatmul.mubr.msk.f32.vlgmr.msra.gmra.mrb[6].mxu0 %vm82_vm1, %v1183_v56 }
 0x523   :  { %1151 = vmatpush3.bf16.msra.mxu0 %v1354_v9  ;;  %1085 = vmatprep.mubr.msk.f32.mxu0 %vm1268_vm0, %v1269_v16  ;;  %v802_v9 = vld [vmem:[#allocation5 + $0x10] sm:$0xff] }
 0x524   :  { %1152 = vmatprep.subr.bf16.mxu0 %v1267_v4  ;;  %v1159_v12 = vpack.c.bf16 %v803_v11, %v802_v9 }
 0x527   :  { %1154 = vmatpush3.bf16.msra.mxu0 %v1363_v15 }
 0x5f5   :  { %v624_v57 = vpop.f32.mrb[6].mxu0 }
 0x5f6   :  { %v629_v58 = vrot.slane %v624_v57, 6  ;;  %v1065_v59 = vpop.f32.mrb[7].mxu0 }
 0x5f8   :  { %v631_v60 = vadd.f32 %v629_v58, %v1391_v27 }
 0x5fa   :  { %1184 = vtanh.f32 %v631_v60 }
 0x604   :  { %v1185_v61 = vpop.eup %1184 }
 0x605   :  { %v634_v62 = vrot.slane %v1185_v61, 2  ;;  %v797_v4 = vsel %vm791_vm4, %v1183_v56, %v1185_v61 }
 0x607   :  { %1075 = vmatmul.mubr.msk.f32.vlgmr.msra.gmra.mrb[6].mxu1 %vm82_vm1, %v634_v62 }
 0x608   :  { %1096 = vmatprep.mubr.msk.f32.mxu1 %vm82_vm1, %v796_v52  ;;  %1158 = vmatpush3.bf16.msra.mxu1 %v1155_v10 }
 0x609   :  { %1160 = vmatprep.subr.bf16.mxu1 %v1159_v12 }
 0x60c   :  { %1162 = vmatpush3.bf16.msra.mxu1 %v1159_v12 }
 0x6da   :  { %v703_v63 = vpop.f32.mrb[6].mxu1 }
 0x6db   :  { %v708_v0 = vrot.slane %v703_v63, 4  ;;  %v1076_v1 = vpop.f32.mrb[7].mxu1 }
 0x6dd   :  { %v710_v2 = vadd.f32 %v708_v0, %v1391_v27 }
 0x6df   :  { %1186 = vtanh.f32 %v710_v2 }
 0x6e9   :  { %v1187_v3 = vpop.eup %1186 }
 0x6ea   :  { %v713_v5 = vrot.slane %v1187_v3, 4  ;;  %v798_v6 = vsel %vm793_vm5, %v797_v4, %v1187_v3 }
 0x6ec   :  { %1086 = vmatmul.mubr.msk.f32.vlgmr.msra.gmra.mrb[8].mxu0 %vm82_vm1, %v713_v5 }
 0x7bf   :  { %v782_v15 = vpop.f32.mrb[8].mxu0 }
 0x7c0   :  { %v787_v16 = vrot.slane %v782_v15, 2  ;;  %v1087_v17 = vpop.f32.mrb[9].mxu0 }
 0x7c2   :  { %v789_v18 = vadd.f32 %v787_v16, %v1391_v27 }
 0x7c4   :  { %1188 = vtanh.f32 %v789_v18 }
 0x7ce   :  { %v1189_v19 = vpop.eup %1188 }
 0x7cf   :  { %v799_v20 = vsel %vm795_vm6, %v798_v6, %v1189_v19 }
 0x7d0   :  { %1097 = vmatmul.mubr.msk.f32.vlgmr.msra.gmra.mrb[8].mxu1 %vm82_vm1, %v799_v20 }
 0x8a3   :  { %v1098_v23 = vpop.f32.mrb[8].mxu1 }
 0x8a4   :  { %v898_v25 = vmul.f32 %v1098_v23, %v895_v22  ;;  %v876_v26 = vpop.f32.mrb[9].mxu1 }
 0x8a5   :  { %v897_v27 = vmul.f32 %v890_v21, %v876_v26 }
 0x8a6   :  { %v902_v29 = vadd.f32 %v900_v24, %v898_v25 }
 0x8a7   :  { %v901_v30 = vadd.f32 %v899_v28, %v897_v27 }
 0x8a8   :  { %904 = vst.msk [vmem:[#allocation7 + $0x8] sm:$0xff] %vm82_vm1, %v902_v29 }
 0x8a9   :  { %903 = vst.msk [vmem:[#allocation7] sm:$0xff] %vm82_vm1, %v901_v30 }
 0x8aa   :  { %1245 = shalt.err (!%p1242_p6)
}
 0x8ab   :  { %s1246_s6 = scalar_lea.hbm %s1476_s7, 256 }
 0x8ac   :  { %p1247_p7 = scmp.ne.s32.totalorder %s1476_s7, %s1246_s6  ;;  %p1250_p8 = scmp.lt.u32.totalorder %s1246_s6, %s1476_s7 }
 0x8ae   :  { %p1252_p9 = pnand %p1250_p8, %p1247_p7 }
 0x8b0   :  { %1255 = shalt.err (!%p1252_p9)
}
 0x8b1   :  { %916 = dma.vmem_to_hbm [thread:$0]  %s911_s23, 256, %s1476_s7, [#allocation4], %s1263_s11, %s1263_s11, %s1264_s12  }
 0x8b2   :  { %1260 = dma.done.wait [#allocation4], 256  }
 0x8b3   :  { %1261 = vsyncadd [#allocation4], 4294967040 }
 0x8b4   :  { %920 = vsyncpa [#allocation3], 1 }
 0x8b5   :  { %921 = vsyncpa [#allocation6], 1 }
 0x8b6   :  { %922 = vsyncpa [#allocation4], 1 }

</bundles_post_ra>
